<compile_context>
chip_gen: v7x
topology: tpu7x:2x2x1
jax: 0.10.0
libtpu: 0.0.40
codegen_flags: <defaults>
</compile_context>

<pallas_src>
import functools

import jax
import jax.numpy as jnp
from jax.experimental import pallas as pl
from jax.experimental.pallas import tpu as pltpu


def _round_up(x, m):
    return (x + m - 1) // m * m


def _round_down(x, m):
    return x // m * m


def _vmem_capacity_bytes():
    try:
        return int(pltpu.get_tpu_info().vmem_capacity_bytes)
    except Exception:
        return 64 * 1024 * 1024          # conservative fallback: v7x physical VMEM


def _default_num_partials():
    # The "parallel" partial split only pays on multi-TensorCore chips (v7x); on
    # single-core chips it just adds one extra tiny output block (harmless).
    try:
        kind = jax.devices()[0].device_kind.lower()
    except Exception:
        return 2
    if "v5e" in kind or "v5 lite" in kind or "v6" in kind:
        return 1                          # single TensorCore per chip
    return 2


def _ce_sum_kernel_cls_sublane(conf_ref, tgt_ref, out_ref, acc_ref, *,
                               n_valid, tile_n, tiles_per_partial):
    """CE-sum partial for (C, tile_n) blocks: classes on sublanes, samples on lanes.

    Used for C < 128 so every vreg lane carries a distinct sample (lane-dense even
    for tiny class counts).
    """
    p = pl.program_id(0)                  # "parallel" partial slice (megacore shard)
    i = pl.program_id(1)                  # "arbitrary" reduction over batch tiles

    @pl.when(i == 0)
    def _init():
        acc_ref[...] = jnp.zeros_like(acc_ref)

    conf = conf_ref[...].astype(jnp.float32)             # (C, tile_n)
    tgt = tgt_ref[...]                                    # (1, tile_n) int32
    C = conf.shape[0]

    # numerically stable cross entropy per sample (per lane): lse(conf) - conf[target]
    cls = jax.lax.broadcasted_iota(jnp.int32, (C, tile_n), 0)
    m = jnp.max(conf, axis=0, keepdims=True)                               # (1, tile_n)
    lse = jnp.log(jnp.sum(jnp.exp(conf - m), axis=0, keepdims=True)) + m   # (1, tile_n)
    tgt_logit = jnp.sum(jnp.where(cls == tgt, conf, 0.0), axis=0, keepdims=True)
    per_sample = lse - tgt_logit                                           # (1, tile_n)

    # Mask batch overrun / phantom tiles using the *logical* column index (not the
    # clamped block index); masking happens before any cross-sample reduction.
    t = p * tiles_per_partial + i
    col = t * tile_n + jax.lax.broadcasted_iota(jnp.int32, (1, tile_n), 1)
    acc_ref[...] += jnp.where(col < n_valid, per_sample, 0.0)

    # Cross-lane reduction + scalar store only once per partial (last inner step).
    @pl.when(i == tiles_per_partial - 1)
    def _finalize():
        out_ref[...] = jnp.zeros_like(out_ref) + jnp.sum(acc_ref[...])


def _ce_sum_kernel_cls_lane(conf_ref, tgt_ref, out_ref, *,
                            n_valid, tile_n, tiles_per_partial):
    """CE-sum partial for (tile_n, C) blocks: samples on sublanes, classes on lanes.

    Used when C >= 128: the natural (N, C) layout is already lane-dense, so the
    wrapper skips the transpose (and its extra HBM pass) entirely.
    """
    p = pl.program_id(0)
    i = pl.program_id(1)

    @pl.when(i == 0)
    def _init():
        out_ref[...] = jnp.zeros_like(out_ref)

    conf = conf_ref[...].astype(jnp.float32)              # (tile_n, C)
    tgt = tgt_ref[...]                                     # (tile_n, 1) int32
    C = conf.shape[1]

    cls = jax.lax.broadcasted_iota(jnp.int32, (tile_n, C), 1)
    m = jnp.max(conf, axis=1, keepdims=True)                               # (tile_n, 1)
    lse = jnp.log(jnp.sum(jnp.exp(conf - m), axis=1, keepdims=True)) + m   # (tile_n, 1)
    tgt_logit = jnp.sum(jnp.where(cls == tgt, conf, 0.0), axis=1, keepdims=True)
    per_sample = lse - tgt_logit                                           # (tile_n, 1)

    t = p * tiles_per_partial + i
    row = t * tile_n + jax.lax.broadcasted_iota(jnp.int32, (tile_n, 1), 0)
    out_ref[...] += jnp.sum(jnp.where(row < n_valid, per_sample, 0.0))


def class_aware_loss(confidence, target, num_classes, *, tile_n=None, num_partials=None):
    """confidence: (N, C) float logits (any float dtype); target: (N,) integer labels."""
    N, C = confidence.shape
    itemsize = jnp.dtype(confidence.dtype).itemsize
    classes_on_lanes = C >= 128            # (N, C) already lane-dense -> no transpose

    # ---- VMEM budget (generation-aware: 64 MiB on v7x, 128 MiB on v5e/v6e) ---------
    vmem_cap = _vmem_capacity_bytes()
    usable = max(16 * 1024 * 1024,
                 min(int(0.6 * vmem_cap), vmem_cap - 24 * 1024 * 1024))

    # Per-sample VMEM bytes: double-buffered inputs + f32 temporaries headroom +
    # 8-sublane / 128-lane padded target buffers + (transposed path) lane accumulator.
    if classes_on_lanes:
        c_pad = _round_up(C, 128)
        per_sample = 2 * c_pad * itemsize + 6 * c_pad * 4 + 2 * 512 + 256
    else:
        sub = max(8, 32 // itemsize)       # sublane multiple for the input dtype
        per_sample = (2 * _round_up(C, sub) * itemsize + 6 * _round_up(C, 8) * 4
                      + 2 * 32 + 32 + 64)
    max_tile_from_vmem = max(128, _round_down(usable // per_sample, 128))

    # ---- batch tile size: big tiles amortize the ~0.35us/step pipeline overhead ----
    if tile_n is None:
        tile_n = (4 * 1024 * 1024) // max(1, C * itemsize)   # ~4 MiB of logits / tile
    tile_n = min(int(tile_n), 65536, max_tile_from_vmem)
    tile_n = max(128, _round_down(tile_n, 128))
    if tile_n >= N:
        tile_n = N                          # single full-extent tile (no 128 padding)

    num_tiles = pl.cdiv(N, tile_n)
    if num_partials is None:
        num_partials = _default_num_partials()
    num_partials = max(1, min(int(num_partials), num_tiles))
    tiles_per_partial = pl.cdiv(num_tiles, num_partials)
    last_block = num_tiles - 1              # phantom tiles clamp here & are masked out

    # ---- request only the VMEM this tiling needs, under the physical limit ---------
    if classes_on_lanes:
        conf_buf = _round_up(tile_n, 8) * _round_up(C, 128) * itemsize
        tgt_buf = _round_up(tile_n, 8) * 128 * 4
        scratch_bytes = 0
        temps = 4 * _round_up(tile_n, 8) * _round_up(C, 128) * 4
    else:
        sub = max(8, 32 // itemsize)
        conf_buf = _round_up(C, sub) * tile_n * itemsize
        tgt_buf = 8 * tile_n * 4
        scratch_bytes = 8 * tile_n * 4
        temps = 4 * _round_up(C, 8) * tile_n * 4
    footprint = 2 * conf_buf + 2 * tgt_buf + scratch_bytes + temps
    vmem_limit = int(min(int(0.75 * vmem_cap),
                         max(16 * 1024 * 1024, footprint + 4 * 1024 * 1024)))

    n_valid = int(N)
    if classes_on_lanes:
        conf_in = confidence                               # (N, C) native dtype
        tgt_in = target.astype(jnp.int32).reshape(N, 1)
        kernel = functools.partial(
            _ce_sum_kernel_cls_lane, n_valid=n_valid, tile_n=tile_n,
            tiles_per_partial=tiles_per_partial)
        in_specs = [
            pl.BlockSpec((tile_n, C),
                         lambda p, i: (jnp.minimum(p * tiles_per_partial + i,
                                                   last_block), 0)),
            pl.BlockSpec((tile_n, 1),
                         lambda p, i: (jnp.minimum(p * tiles_per_partial + i,
                                                   last_block), 0)),
        ]
        scratch_shapes = []
    else:
        # TODO(synk): this transpose is one extra HBM pass over the logits; produce
        # them as (C, N) upstream (or fuse into the producer) for small class counts.
        conf_in = jnp.transpose(confidence)                # (C, N) native dtype
        tgt_in = target.astype(jnp.int32).reshape(1, N)
        kernel = functools.partial(
            _ce_sum_kernel_cls_sublane, n_valid=n_valid, tile_n=tile_n,
            tiles_per_partial=tiles_per_partial)
        in_specs = [
            pl.BlockSpec((C, tile_n),
                         lambda p, i: (0, jnp.minimum(p * tiles_per_partial + i,
                                                      last_block))),
            pl.BlockSpec((1, tile_n),
                         lambda p, i: (0, jnp.minimum(p * tiles_per_partial + i,
                                                      last_block))),
        ]
        scratch_shapes = [pltpu.VMEM((1, tile_n), jnp.float32)]

    cost = pl.CostEstimate(
        flops=int(6 * N * C),
        transcendentals=int(N * (C + 1)),
        bytes_accessed=int(N * C * itemsize + N * 4 + num_partials * 4),
    )

    partials = pl.pallas_call(
        kernel,
        out_shape=jax.ShapeDtypeStruct((num_partials, 1, 1), jnp.float32),
        grid_spec=pltpu.PrefetchScalarGridSpec(
            num_scalar_prefetch=0,
            grid=(num_partials, tiles_per_partial),
            in_specs=in_specs,
            out_specs=pl.BlockSpec((1, 1, 1), lambda p, i: (p, 0, 0)),
            scratch_shapes=scratch_shapes,
        ),
        compiler_params=pltpu.CompilerParams(
            dimension_semantics=("parallel", "arbitrary"),
            vmem_limit_bytes=vmem_limit,
        ),
        cost_estimate=cost,
    )(conf_in, tgt_in)

    ce_sum = jnp.sum(partials)
    # After the reference's renormalization sum(class_weights) == num_classes, so
    # torch.sum(class_weights * ce_sum) == num_classes * ce_sum (exact identity).
    # TODO(synk): class-axis is not tiled; extremely large C (>~50k) would need an
    # online-LSE reduction over class tiles.
    return jnp.float32(num_classes) * ce_sum


if __name__ == "__main__":
    key = jax.random.PRNGKey(0)
    k1, k2, k3, k4, k5, k6 = jax.random.split(key, 6)

    def reference(confidence, target, num_classes):
        # pure-JAX reference of the PyTorch forward (including the weight branch)
        conf = confidence.astype(jnp.float32)
        logp = jax.nn.log_softmax(conf, axis=-1)
        ce = -jnp.sum(jnp.take_along_axis(logp, target[:, None].astype(jnp.int32),
                                          axis=-1))
        counts = jnp.sum(jax.nn.one_hot(target, num_classes), axis=0)
        present = counts > 0
        frac = counts / jnp.sum(counts)
        w = jnp.where(present, (1 - frac) / (1 - frac ** 4), 0.0)
        w = w / jnp.sum(w) * num_classes
        return jnp.sum(w * ce)

    # --- test 1: small class count (class-on-sublane path), trivial single tile -----
    nc1, n1 = 4, 16
    conf1 = jax.random.normal(k1, (n1, nc1), dtype=jnp.float32)
    tgt1 = jax.random.randint(k2, (n1,), 0, nc1, dtype=jnp.int32)
    loss1 = class_aware_loss(conf1, tgt1, nc1)
    jax.block_until_ready(loss1)
    ref1 = reference(conf1, tgt1, nc1)
    assert jnp.allclose(loss1, ref1, rtol=1e-5, atol=1e-4), (loss1, ref1)

    # --- test 2: class-on-sublane path, multi-tile + ragged last tile + phantom tile
    nc2, n2 = 5, 300
    conf2 = jax.random.normal(k3, (n2, nc2), dtype=jnp.float32)
    tgt2 = jax.random.randint(k4, (n2,), 0, nc2, dtype=jnp.int32)
    loss2 = class_aware_loss(conf2, tgt2, nc2, tile_n=128, num_partials=2)
    jax.block_until_ready(loss2)
    ref2 = reference(conf2, tgt2, nc2)
    assert jnp.allclose(loss2, ref2, rtol=1e-5, atol=1e-3), (loss2, ref2)

    # --- test 3: class-on-lane path (C >= 128, no wrapper transpose), bf16 logits ---
    nc3, n3 = 128, 300
    conf3 = jax.random.normal(k5, (n3, nc3), dtype=jnp.float32).astype(jnp.bfloat16)
    tgt3 = jax.random.randint(k6, (n3,), 0, nc3, dtype=jnp.int32)
    loss3 = class_aware_loss(conf3, tgt3, nc3, tile_n=128, num_partials=2)
    jax.block_until_ready(loss3)
    ref3 = reference(conf3, tgt3, nc3)
    assert jnp.allclose(loss3, ref3, rtol=1e-4, atol=1e-2), (loss3, ref3)

    print("KERNEL_OK")
</pallas_src>

<mosaic_0001>
module attributes {stable_mosaic.version = 11 : i64} {
  func.func @_ce_sum_kernel_cls_sublane(%arg0: i32, %arg1: i32, %arg2: memref<4x16xf32, #tpu.memory_space<vmem>>, %arg3: memref<1x16xi32, #tpu.memory_space<vmem>>, %arg4: memref<1x1x1xf32, #tpu.memory_space<vmem>>, %arg5: memref<1x16xf32, #tpu.memory_space<vmem>>) attributes {dimension_semantics = [#tpu.dimension_semantics<parallel>, #tpu.dimension_semantics<arbitrary>], iteration_bounds = array<i64: 1, 1>, scalar_prefetch = 0 : i64, scratch_operands = 1 : i64, tpu.core_type = #tpu.core_type<tc>, window_params = [{transform_indices = @transform_0, window_bounds = array<i64: 4, 16>}, {transform_indices = @transform_1, window_bounds = array<i64: 1, 16>}, {transform_indices = @transform_2, window_bounds = array<i64: 1, 1, 1>}]} {
    %c0_i32 = arith.constant 0 : i32
    %0 = arith.cmpi eq, %arg1, %c0_i32 : i32
    %1 = arith.extui %0 : i1 to i32
    %c0_i32_0 = arith.constant 0 : i32
    %2 = arith.cmpi ne, %1, %c0_i32_0 : i32
    scf.if %2 {
      %cst_15 = arith.constant 0.000000e+00 : f32
      %38 = vector.broadcast %cst_15 : f32 to vector<1x16xf32>
      %c0_16 = arith.constant 0 : index
      %c0_17 = arith.constant 0 : index
      %39 = vector.load %arg5[%c0_16, %c0_17] : memref<1x16xf32, #tpu.memory_space<vmem>>, vector<1x16xf32>
      tpu.vector_store %arg5[%c0_16, %c0_17], %38 {strides = array<i32>} : memref<1x16xf32, #tpu.memory_space<vmem>>, vector<1x16xf32>,
    } else {
    }
    %c0 = arith.constant 0 : index
    %c0_1 = arith.constant 0 : index
    %3 = vector.load %arg2[%c0, %c0_1] : memref<4x16xf32, #tpu.memory_space<vmem>>, vector<4x16xf32>
    %c0_2 = arith.constant 0 : index
    %c0_3 = arith.constant 0 : index
    %4 = vector.load %arg3[%c0_2, %c0_3] : memref<1x16xi32, #tpu.memory_space<vmem>>, vector<1x16xi32>
    %5 = tpu.iota {dimensions = array<i32: 0>} : vector<4x16xi32>
    %cst = arith.constant dense<0xFF800000> : vector<16xf32>
    %6 = vector.multi_reduction <maximumf>, %3, %cst [0] : vector<4x16xf32> to vector<16xf32>
    %7 = vector.shape_cast %6 : vector<16xf32> to vector<1x16xf32>
    %8 = vector.broadcast %7 : vector<1x16xf32> to vector<4x16xf32>
    %9 = arith.subf %3, %8 : vector<4x16xf32>
    %10 = math.exp %9 : vector<4x16xf32>
    %cst_4 = arith.constant dense<0.000000e+00> : vector<16xf32>
    %11 = vector.multi_reduction <add>, %10, %cst_4 [0] : vector<4x16xf32> to vector<16xf32>
    %12 = vector.shape_cast %11 : vector<16xf32> to vector<1x16xf32>
    %13 = math.log %12 : vector<1x16xf32>
    %14 = arith.addf %13, %7 : vector<1x16xf32>
    %15 = vector.broadcast %4 : vector<1x16xi32> to vector<4x16xi32>
    %16 = arith.cmpi eq, %5, %15 : vector<4x16xi32>
    %cst_5 = arith.constant 0.000000e+00 : f32
    %17 = vector.broadcast %cst_5 : f32 to vector<4x16xf32>
    %18 = arith.select %16, %3, %17 : vector<4x16xi1>, vector<4x16xf32>
    %cst_6 = arith.constant dense<0.000000e+00> : vector<16xf32>
    %19 = vector.multi_reduction <add>, %18, %cst_6 [0] : vector<4x16xf32> to vector<16xf32>
    %20 = vector.shape_cast %19 : vector<16xf32> to vector<1x16xf32>
    %21 = arith.subf %14, %20 : vector<1x16xf32>
    %c1_i32 = arith.constant 1 : i32
    %22 = arith.muli %arg0, %c1_i32 : i32
    %23 = arith.addi %22, %arg1 : i32
    %c16_i32 = arith.constant 16 : i32
    %24 = arith.muli %23, %c16_i32 : i32
    %25 = tpu.iota {dimensions = array<i32: 1>} : vector<1x16xi32>
    %26 = vector.broadcast %24 : i32 to vector<1x16xi32>
    %27 = arith.addi %26, %25 : vector<1x16xi32>
    %c0_7 = arith.constant 0 : index
    %c0_8 = arith.constant 0 : index
    %28 = vector.load %arg5[%c0_7, %c0_8] : memref<1x16xf32, #tpu.memory_space<vmem>>, vector<1x16xf32>
    %c16_i32_9 = arith.constant 16 : i32
    %29 = vector.broadcast %c16_i32_9 : i32 to vector<1x16xi32>
    %30 = arith.cmpi slt, %27, %29 : vector<1x16xi32>
    %cst_10 = arith.constant 0.000000e+00 : f32
    %31 = vector.broadcast %cst_10 : f32 to vector<1x16xf32>
    %32 = arith.select %30, %21, %31 : vector<1x16xi1>, vector<1x16xf32>
    %33 = arith.addf %28, %32 : vector<1x16xf32>
    %c0_11 = arith.constant 0 : index
    %c0_12 = arith.constant 0 : index
    %34 = vector.load %arg5[%c0_11, %c0_12] : memref<1x16xf32, #tpu.memory_space<vmem>>, vector<1x16xf32>
    tpu.vector_store %arg5[%c0_11, %c0_12], %33 {strides = array<i32>} : memref<1x16xf32, #tpu.memory_space<vmem>>, vector<1x16xf32>,
    %c0_i32_13 = arith.constant 0 : i32
    %35 = arith.cmpi eq, %arg1, %c0_i32_13 : i32
    %36 = arith.extui %35 : i1 to i32
    %c0_i32_14 = arith.constant 0 : i32
    %37 = arith.cmpi ne, %36, %c0_i32_14 : i32
    scf.if %37 {
      %cst_15 = arith.constant 0.000000e+00 : f32
      %38 = vector.broadcast %cst_15 : f32 to vector<1x1x1xf32>
      %c0_16 = arith.constant 0 : index
      %c0_17 = arith.constant 0 : index
      %39 = vector.load %arg5[%c0_16, %c0_17] : memref<1x16xf32, #tpu.memory_space<vmem>>, vector<1x16xf32>
      %40 = vector.shape_cast %39 : vector<1x16xf32> to vector<1x1x16xf32>
      %cst_18 = arith.constant dense<0.000000e+00> : vector<1xf32>
      %41 = vector.multi_reduction <add>, %40, %cst_18 [1, 2] : vector<1x1x16xf32> to vector<1xf32>
      %42 = vector.shape_cast %41 : vector<1xf32> to vector<1x1x1xf32>
      %43 = vector.extract %42[0, 0, 0] : f32 from vector<1x1x1xf32>
      %44 = vector.broadcast %43 : f32 to vector<1x1x1xf32>
      %45 = arith.addf %38, %44 : vector<1x1x1xf32>
      %c0_19 = arith.constant 0 : index
      %c0_20 = arith.constant 0 : index
      %c0_21 = arith.constant 0 : index
      %46 = vector.load %arg4[%c0_19, %c0_20, %c0_21] : memref<1x1x1xf32, #tpu.memory_space<vmem>>, vector<1x1x1xf32>
      tpu.vector_store %arg4[%c0_19, %c0_20, %c0_21], %45 {strides = array<i32>} : memref<1x1x1xf32, #tpu.memory_space<vmem>>, vector<1x1x1xf32>,
    } else {
    }
    return
  }
  func.func @transform_0(%arg0: i32, %arg1: i32) -> (i32, i32) {
    %c1_i32 = arith.constant 1 : i32
    %0 = arith.muli %arg0, %c1_i32 : i32
    %1 = arith.addi %0, %arg1 : i32
    %c0_i32 = arith.constant 0 : i32
    %2 = arith.minsi %1, %c0_i32 : i32
    %c0_i32_0 = arith.constant 0 : i32
    %c0_i32_1 = arith.constant 0 : i32
    return %c0_i32_0, %2 : i32, i32
  }
  func.func @transform_1(%arg0: i32, %arg1: i32) -> (i32, i32) {
    %c1_i32 = arith.constant 1 : i32
    %0 = arith.muli %arg0, %c1_i32 : i32
    %1 = arith.addi %0, %arg1 : i32
    %c0_i32 = arith.constant 0 : i32
    %2 = arith.minsi %1, %c0_i32 : i32
    %c0_i32_0 = arith.constant 0 : i32
    %c0_i32_1 = arith.constant 0 : i32
    return %c0_i32_0, %2 : i32, i32
  }
  func.func @transform_2(%arg0: i32, %arg1: i32) -> (i32, i32, i32) {
    %c0_i32 = arith.constant 0 : i32
    %c0_i32_0 = arith.constant 0 : i32
    %c0_i32_1 = arith.constant 0 : i32
    return %arg0, %c0_i32, %c0_i32_0 : i32, i32, i32
  }
}

</mosaic_0001>

<bundles_post_ra>
// kernel: tpu_custom_call.1
= control target key start
LH: loop header
LB: loop body
LE: loop exit
PB: predicated region body
PF: predicated region fallthrough
CT: control target
= control target key end

     0   :  { %7 = vsyncpa [#allocation4], 0  ;;  %s260_s0 = inlined_call_operand.hbm [shape: f32[4,16], index: 0, kind: input, shape index: {}]   ;;  %s261_s1 = inlined_call_operand.vmem [shape: s32[1,16], index: 1, kind: input, shape index: {}]   ;;  %s262_s2 = inlined_call_operand.hbm [shape: f32[1,1,1], index: 2, kind: output, shape index: {}]  }
   0x1   :  { %8 = vsyncpa [#allocation5], 0  ;;  %s209_s9 = smov [#allocation3]   ;;  %s161_s13 = scalar_lea.hbm %s260_s0, 64 }
   0x2   :  { %s20_s10 = sshll.u32 %s209_s9, 4  ;;  %p162_p0 = scmp.ne.s32.totalorder %s260_s0, %s161_s13  ;;  %s21_s10 = int_to_ptr.vmem [resolvable:$true] %s20_s10 }
   0x3   :  { %p165_p1 = scmp.lt.u32.totalorder %s161_s13, %s260_s0 }
   0x5   :  { %p167_p2 = pnand %p165_p1, %p162_p0 }
   0x7   :  { %170 = shalt.err (!%p167_p2)
}
   0x8   :  { %s171_s18 = scalar_lea.vmem %s21_s10, 64  ;;  %p176_p4 = scmp.lt.s32.totalorder %s21_s10, %s21_s10 }
   0x9   :  { %p172_p3 = scmp.ne.s32.totalorder %s21_s10, %s171_s18  ;;  %p177_p5 = scmp.lt.s32.totalorder %s171_s18, %s171_s18 }
   0xb   :  { %p178_p6 = por %p177_p5, %p176_p4 }
   0xd   :  { %p179_p7 = pnand %p178_p6, %p172_p3 }
   0xf   :  { %182 = shalt.err (!%p179_p7)
}
  0x10   :  { %23 = dma.hbm_to_vmem [thread:$0]  %s260_s0, 64, %s21_s10, [#allocation4]  }
  0x11   :  { %205 = dma.done.wait [#allocation4], 64  }
  0x12   :  { %206 = vsyncadd [#allocation4], 4294967232  ;;  %vm60_vm0 = vcmask 122880   ;;  %v210_v0 = vmov 0.0   ;;  %vm66_vm1 = vcmask 125952   ;;  %v64_v10 = vlaneseq }
  0x13   :  { %61 = vst.msk [vmem:[#allocation2] sm:$0x1] %vm60_vm0, %v210_v0  ;;  %v62_v1 = vld [vmem:[#allocation3] sm:$0xf]  ;;  %v151_v13 = vld [vmem:[%s261_s1] ss:$0 sm:$0xff] }
  0x14   :  { %v67_v2 = vsel %vm66_vm1, %v62_v1, -inf  ;;  %v65_v12 = vshrl.u32 %v64_v10, 7  ;;  %v104_v30 = vand.u32 127, %v64_v10  ;;  %s211_s1 = smov [#allocation6]   ;;  %vm129_vm4 = vcmask 0  }
  0x15   :  { %v68_v3 = vrot.slane %v67_v2, 4  ;;  %s137_s22 = sshll.u32 %s211_s1, 4  ;;  %s138_s22 = int_to_ptr.vmem [resolvable:$true] %s137_s22 }
  0x16   :  { %vm91_vm2 = vcmp.eq.s32.totalorder %v65_v12, %v151_v13  ;;  %vm108_vm3 = vcmp.lt.s32.totalorder %v104_v30, 16  ;;  %s183_s24 = scalar_lea.vmem %s138_s22, 16  ;;  %s187_s25 = scalar_lea.vmem %s138_s22, 32 }
  0x17   :  { %v69_v4 = vmax.f32 %v67_v2, %v68_v3  ;;  %v92_v14 = vsel %vm91_vm2, %v62_v1, 0.0  ;;  %p184_p8 = scmp.ne.s32.totalorder %s138_s22, %s183_s24  ;;  %p188_p9 = scmp.lt.s32.totalorder %s138_s22, %s138_s22 }
  0x18   :  { %v93_v18 = vsel %vm66_vm1, %v92_v14, 0.0  ;;  %p189_p10 = scmp.lt.s32.totalorder %s187_s25, %s183_s24 }
  0x19   :  { %v70_v5 = vrot.slane %v69_v4, 2  ;;  %v94_v20 = vrot.slane %v93_v18, 4 }
  0x1a   :  { %v107_v35 = vld [vmem:[#allocation2] sm:$0x1]  ;;  %p190_p11 = por %p189_p10, %p188_p9 }
  0x1b   :  { %v71_v6 = vmax.f32 %v69_v4, %v70_v5  ;;  %v95_v23 = vadd.f32 %v94_v20, %v93_v18 }
  0x1c   :  { %p191_p12 = pnand %p190_p11, %p184_p8 }
  0x1d   :  { %v72_v7 = vrot.slane %v71_v6, 1  ;;  %v96_v26 = vrot.slane %v95_v23, 2 }
  0x1f   :  { %v73_v8 = vmax.f32 %v71_v6, %v72_v7  ;;  %v97_v27 = vadd.f32 %v96_v26, %v95_v23 }
  0x21   :  { %v74_v9 = vsub.f32 %v62_v1, %v73_v8  ;;  %v98_v28 = vrot.slane %v97_v27, 1 }
  0x23   :  { %v75_v11 = vmul.f32 1.442695, %v74_v9  ;;  %v99_v32 = vadd.f32 %v98_v28, %v97_v27 }
  0x25   :  { %157 = vpow2.f32 %v75_v11 }
  0x2f   :  { %v158_v15 = vpop.eup %157 }
  0x30   :  { %v77_v16 = vsel %vm66_vm1, %v158_v15, 0.0 }
  0x31   :  { %v78_v17 = vrot.slane %v77_v16, 4 }
  0x33   :  { %v79_v19 = vadd.f32 %v78_v17, %v77_v16 }
  0x35   :  { %v80_v21 = vrot.slane %v79_v19, 2 }
  0x37   :  { %v81_v22 = vadd.f32 %v80_v21, %v79_v19 }
  0x39   :  { %v82_v24 = vrot.slane %v81_v22, 1 }
  0x3b   :  { %v83_v25 = vadd.f32 %v82_v24, %v81_v22 }
  0x3d   :  { %159 = vlog2.f32 %v83_v25 }
  0x47   :  { %v160_v29 = vpop.eup %159 }
  0x48   :  { %v85_v31 = vmul.f32 0.6931472, %v160_v29 }
  0x4a   :  { %v86_v33 = vadd.f32 %v85_v31, %v73_v8 }
  0x4c   :  { %v100_v34 = vsub.f32 %v86_v33, %v99_v32 }
  0x4e   :  { %v109_v36 = vsel %vm108_vm3, %v100_v34, 0.0 }
  0x4f   :  { %v110_v37 = vadd.f32 %v109_v36, %v107_v35 }
  0x51   :  { %112 = vst.msk [vmem:[#allocation2] sm:$0x1] %vm60_vm0, %v110_v37 }
  0x58   :  { %v116_v38 = vld [vmem:[#allocation2] sm:$0x1] }
  0x59   :  { %v117_v39 = vsel %vm60_vm0, %v116_v38, 0.0 }
  0x5a   :  { %118 = vadd.xlane.f32.xlu0 %v117_v39 }
  0xe7   :  { %v119_v40 = vpop.xlane.xlu0 %118 }
  0xe8   :  { %v120_v41 = vrot.slane %v119_v40, 4 }
  0xea   :  { %v121_v42 = vadd.f32 %v120_v41, %v119_v40 }
  0xec   :  { %v122_v43 = vrot.slane %v121_v42, 2 }
  0xee   :  { %v123_v44 = vadd.f32 %v122_v43, %v121_v42 }
  0xf0   :  { %v124_v45 = vrot.slane %v123_v44, 1 }
  0xf2   :  { %v125_v46 = vadd.f32 %v124_v45, %v123_v44 }
  0xf4   :  { %152 = vpush %v125_v46 }
 0x125   :  { %s153_s23 = spop %152 }
 0x126   :  { %v127_v47 = vstv %s153_s23 }
 0x127   :  { %130 = vst.msk [vmem:[#allocation6] sm:$0x1] %vm129_vm4, %v127_v47 }
 0x128   :  { %194 = shalt.err (!%p191_p12)
}
 0x129   :  { %s195_s28 = scalar_lea.hbm %s262_s2, 16 }
 0x12a   :  { %p196_p13 = scmp.ne.s32.totalorder %s262_s2, %s195_s28  ;;  %p199_p0 = scmp.lt.u32.totalorder %s195_s28, %s262_s2 }
 0x12c   :  { %p201_p1 = pnand %p199_p0, %p196_p13 }
 0x12e   :  { %204 = shalt.err (!%p201_p1)
}
 0x12f   :  { %140 = dma.vmem_to_hbm [thread:$0]  %s138_s22, 16, %s262_s2, [#allocation5]  }
 0x130   :  { %207 = dma.done.wait [#allocation5], 16  }
 0x131   :  { %208 = vsyncadd [#allocation5], 4294967280 }
 0x132   :  { %144 = vsyncpa [#allocation4], 1 }
 0x133   :  { %145 = vsyncpa [#allocation5], 1 }

</bundles_post_ra>
